<compile_context>
chip_gen: v6e
topology: v6e:2x2x1
jax: 0.10.0
libtpu: 0.0.40
codegen_flags: <defaults>
</compile_context>

<pallas_src>
import jax
import jax.numpy as jnp
from jax.experimental import pallas as pl
from jax.experimental.pallas import tpu as pltpu

_LANE = 128            # lane width of a vreg: keep stores unmasked / lane-dense
_MAX_TILE_ROWS = 4096  # 4096 x 128 f32 = 2 MiB per tile per array; with in+out
                       # double-buffering that is 8 MiB << 32 MiB scoped VMEM
                       # even on v7x (64 MiB physical per TC).


def _copy_kernel(x_ref, o_ref):
    # Elementwise identity: copy the VMEM tile straight through.
    o_ref[...] = x_ref[...]


def unet_forward(x: jax.Array) -> jax.Array:
    """UNet.forward == nn.Identity: the fastest correct implementation is no
    kernel at all (zero HBM traffic, zero launch overhead)."""
    return x


def _pick_tile_rows(rows: int) -> int:
    """Largest legal row tile: full extent if small, else a multiple-of-8
    divisor of `rows` (satisfies the (8,128) block rule)."""
    if rows <= _MAX_TILE_ROWS:
        return rows
    for t in range(_MAX_TILE_ROWS, 7, -1):
        if t % 8 == 0 and rows % t == 0:
            return t
    return rows  # fallback: single full block


@jax.jit
def unet_forward_pallas(x: jax.Array) -> jax.Array:
    """Materializing identity (Pallas copy) for cases that require a fresh
    output buffer.  Lane-dense layout + tiled, pipelined, in-place copy."""
    orig_shape = x.shape
    total = x.size

    if total % _LANE != 0:
        # TODO(synk): pad-to-128 path for awkward sizes; single full block is
        # legal (block_shape == array shape) and correct, just not tiled.
        x2d = x.reshape(1, total)
        rows, tile_r = 1, 1
    else:
        rows = total // _LANE
        x2d = x.reshape(rows, _LANE)          # lane-dense: last dim = 128
        tile_r = _pick_tile_rows(rows)

    lane = x2d.shape[1]
    grid = (rows // tile_r,)

    out2d = pl.pallas_call(
        _copy_kernel,
        out_shape=jax.ShapeDtypeStruct(x2d.shape, x2d.dtype),
        grid_spec=pltpu.PrefetchScalarGridSpec(
            num_scalar_prefetch=0,
            grid=grid,
            in_specs=[pl.BlockSpec((tile_r, lane), lambda i: (i, 0))],
            out_specs=pl.BlockSpec((tile_r, lane), lambda i: (i, 0)),
        ),
        compiler_params=pltpu.CompilerParams(
            # "parallel": lets v7x shard the copy across its 2 TensorCores;
            # neutral on single-TC v5e/v6e.
            dimension_semantics=("parallel",),
        ),
        # Reuse the input HBM buffer for the output: no second slab, and the
        # copy becomes an in-place touch (XLA copy-inserts if x is still live).
        input_output_aliases={0: 0},
    )(x2d)

    return out2d.reshape(orig_shape)


if __name__ == "__main__":
    key = jax.random.PRNGKey(0)
    # Small NCHW input consistent with the module's forward.
    x = jax.random.normal(key, (2, 4, 16, 16), dtype=jnp.float32)

    # True forward (nn.Identity): free, no kernel.
    y_identity = unet_forward(x)

    # Pallas copy path: run the kernel once and block on it.
    y_pallas = unet_forward_pallas(x)
    jax.block_until_ready(y_pallas)

    assert y_identity.shape == x.shape and y_identity.dtype == x.dtype
    assert y_pallas.shape == x.shape and y_pallas.dtype == x.dtype
    assert bool(jnp.all(y_identity == x))
    assert bool(jnp.all(y_pallas == x))

    print("KERNEL_OK")
</pallas_src>

<mosaic_0001>
module attributes {stable_mosaic.version = 11 : i64} {
  func.func @_copy_kernel(%arg0: i32, %arg1: memref<16x128xf32, #tpu.memory_space<vmem>>, %arg2: memref<16x128xf32, #tpu.memory_space<vmem>>) attributes {dimension_semantics = [#tpu.dimension_semantics<parallel>], iteration_bounds = array<i64: 1>, scalar_prefetch = 0 : i64, scratch_operands = 0 : i64, tpu.core_type = #tpu.core_type<tc>, window_params = [{transform_indices = @transform_0, window_bounds = array<i64: 16, 128>}, {transform_indices = @transform_1, window_bounds = array<i64: 16, 128>}]} {
    %c0 = arith.constant 0 : index
    %c0_0 = arith.constant 0 : index
    %0 = vector.load %arg1[%c0, %c0_0] : memref<16x128xf32, #tpu.memory_space<vmem>>, vector<16x128xf32>
    %c0_1 = arith.constant 0 : index
    %c0_2 = arith.constant 0 : index
    %1 = vector.load %arg2[%c0_1, %c0_2] : memref<16x128xf32, #tpu.memory_space<vmem>>, vector<16x128xf32>
    tpu.vector_store %arg2[%c0_1, %c0_2], %0 {strides = array<i32>} : memref<16x128xf32, #tpu.memory_space<vmem>>, vector<16x128xf32>,
    return
  }
  func.func @transform_0(%arg0: i32) -> (i32, i32) {
    %c0_i32 = arith.constant 0 : i32
    %c0_i32_0 = arith.constant 0 : i32
    return %arg0, %c0_i32 : i32, i32
  }
  func.func @transform_1(%arg0: i32) -> (i32, i32) {
    %c0_i32 = arith.constant 0 : i32
    %c0_i32_0 = arith.constant 0 : i32
    return %arg0, %c0_i32 : i32, i32
  }
}

</mosaic_0001>

<bundles_post_ra>
// kernel: unet_forward_pallas.1
= control target key start
LH: loop header
LB: loop body
LE: loop exit
PB: predicated region body
PF: predicated region fallthrough
CT: control target
= control target key end

     0   :  { %s38_s0 = inlined_call_operand.vmem [shape: f32[16,128], index: 0, kind: input, shape index: {}, may-alias: {0,1}]   ;;  %s39_s1 = inlined_call_operand.vmem [shape: f32[16,128], index: 1, kind: output, shape index: {}, may-alias: {0,1}]  }
   0x1   :  { %v8_v0 = vld [vmem:[%s38_s0] sm:$0xff]  ;;  %v9_v1 = vld [vmem:[%s38_s0 + $0x8] sm:$0xff] }
   0x2   :  { %10 = vst [vmem:[%s39_s1] sm:$0xff] %v8_v0  ;;  %11 = vst [vmem:[%s39_s1 + $0x8] sm:$0xff] %v9_v1 }

</bundles_post_ra>
